<compile_context>
chip_gen: v5e
topology: v5e:2x2
jax: 0.10.0
libtpu: 0.0.40
codegen_flags: <defaults>
</compile_context>

<pallas_src>
import math
import functools

import jax
import jax.numpy as jnp
from jax.experimental import pallas as pl
from jax.experimental.pallas import tpu as pltpu


_DOT_PRECISION = jax.lax.Precision.HIGHEST


def _round_up(v, m):
    return -(-v // m) * m


# ---------------------------------------------------------------------------
# Pass 1 (median path only): pdist tile with a K-tiled contraction.
#   x:[tm,tk], yT:[tk,tn], xsq:[tm,1], ysq:[1,tn]; acc is a VMEM f32 scratch.
# ---------------------------------------------------------------------------
def _pdist_kernel(x_ref, yT_ref, xsq_ref, ysq_ref, pdist_ref, acc_ref):
    k = pl.program_id(2)

    @pl.when(k == 0)
    def _():
        acc_ref[...] = jnp.zeros_like(acc_ref)

    acc_ref[...] += jnp.dot(x_ref[...], yT_ref[...],
                            preferred_element_type=jnp.float32,
                            precision=_DOT_PRECISION)

    @pl.when(k == pl.num_programs(2) - 1)
    def _():
        pdist_ref[...] = xsq_ref[...] + ysq_ref[...] - 2.0 * acc_ref[...]


# ---------------------------------------------------------------------------
# Fused mix kernel (used for both the band_width path and the finalize pass):
# recomputes inner on the MXU (no pdist HBM readback, no cancellation) and
# applies exp(pdist*scale) + r*(inner+c)^2.  scale = -0.5/sigma lives in SMEM.
# NOTE: for D >> tm a pdist-reading finalize would move fewer HBM bytes; the
# recompute variant is chosen for accuracy and for the common D << tm case.
# ---------------------------------------------------------------------------
def _mix_kernel(scale_ref, x_ref, yT_ref, xsq_ref, ysq_ref, out_ref, acc_ref,
                *, r, c):
    k = pl.program_id(2)

    @pl.when(k == 0)
    def _():
        acc_ref[...] = jnp.zeros_like(acc_ref)

    acc_ref[...] += jnp.dot(x_ref[...], yT_ref[...],
                            preferred_element_type=jnp.float32,
                            precision=_DOT_PRECISION)

    @pl.when(k == pl.num_programs(2) - 1)
    def _():
        inner = acc_ref[...]
        pdist = xsq_ref[...] + ysq_ref[...] - 2.0 * inner
        out_ref[...] = (jnp.exp(pdist * scale_ref[0, 0])
                        + r * (inner + c) ** 2)


# ---------------------------------------------------------------------------
# Exact median without a sort: bisection on the order-preserving uint32 key.
# Each iteration is one fused streaming count pass over the matrix (both
# pivots share the same read), ~log2(key range) <= 32 passes total vs. a full
# O(NM log NM) multi-pass sort.
# ---------------------------------------------------------------------------
def _f32_to_ordered_u32(v):
    b = jax.lax.bitcast_convert_type(v, jnp.uint32)
    return jnp.where(b < jnp.uint32(0x80000000),          # non-negative float
                     b | jnp.uint32(0x80000000),
                     b ^ jnp.uint32(0xFFFFFFFF))           # negative: flip all


def _ordered_u32_to_f32(k):
    b = jnp.where(k >= jnp.uint32(0x80000000),             # was non-negative
                  k ^ jnp.uint32(0x80000000),
                  k ^ jnp.uint32(0xFFFFFFFF))
    return jax.lax.bitcast_convert_type(b, jnp.float32)


def _exact_median(values):
    """Exact median (torch convention: mean of the two middle order stats for
    even length).  Requires values.size < 2**31 (int32 counts)."""
    total = values.size                       # static python int
    keys = _f32_to_ordered_u32(values)
    k1 = (total - 1) // 2 + 1                 # 1-indexed rank of sorted[(n-1)//2]
    k2 = total // 2 + 1                       # 1-indexed rank of sorted[n//2]
    kmin = jnp.min(keys)
    kmax = jnp.max(keys)

    def cond(s):
        lo1, hi1, lo2, hi2 = s
        return (lo1 < hi1) | (lo2 < hi2)

    def body(s):
        lo1, hi1, lo2, hi2 = s
        mid1 = lo1 + ((hi1 - lo1) >> jnp.uint32(1))
        mid2 = lo2 + ((hi2 - lo2) >> jnp.uint32(1))
        c1 = jnp.sum((keys <= mid1).astype(jnp.int32))
        c2 = jnp.sum((keys <= mid2).astype(jnp.int32))
        lo1n = jnp.where(c1 >= k1, lo1, mid1 + jnp.uint32(1))
        hi1n = jnp.where(c1 >= k1, mid1, hi1)
        lo2n = jnp.where(c2 >= k2, lo2, mid2 + jnp.uint32(1))
        hi2n = jnp.where(c2 >= k2, mid2, hi2)
        return lo1n, hi1n, lo2n, hi2n

    lo1, _, lo2, _ = jax.lax.while_loop(cond, body, (kmin, kmax, kmin, kmax))
    return 0.5 * (_ordered_u32_to_f32(lo1) + _ordered_u32_to_f32(lo2))


# ---------------------------------------------------------------------------
# Wrapper
# ---------------------------------------------------------------------------
def _vmem_capacity_bytes():
    try:
        info = pltpu.get_tpu_info()
        cap = getattr(info, "vmem_capacity_bytes", None)
        if cap:
            return int(cap)
    except Exception:
        pass
    return 64 << 20        # conservative default (v7x per-TC VMEM)


def _vmem_estimate(tm, tn, tk):
    # Double-buffered f32 blocks (x, yT, out, xsq padded to 128 lanes,
    # ysq padded to 8 sublanes) + single-buffered f32 accumulator scratch.
    dbl, f = 2, 4
    return f * (dbl * (tm * tk + tk * tn + tm * tn + tm * 128 + 8 * tn)
                + tm * tn)


@functools.partial(jax.jit,
                   static_argnames=("band_width", "r", "c", "tm", "tn"))
def _mix_forward_impl(x, y, *, band_width, r, c, tm, tn):
    x = x.astype(jnp.float32)
    y = y.astype(jnp.float32)
    N, D = x.shape
    M = y.shape[0]

    # --- per-generation VMEM budget ----------------------------------------
    cap = _vmem_capacity_bytes()
    if cap >= (100 << 20):          # v5e / v6e: 128 MiB physical
        budget, vmem_limit = 48 << 20, 64 << 20
    else:                           # v7x: 64 MiB physical (32 MiB scoped default)
        budget, vmem_limit = 22 << 20, 30 << 20

    # --- K split: cap the contraction tile so D never inflates the blocks ---
    max_tk = 1024
    nk = -(-D // max_tk)
    if nk == 1:
        tk, d_pad = D, D            # block dim == full dim -> no (8,128) issue
    else:
        tk = _round_up(-(-D // nk), 128)
        d_pad = nk * tk

    # --- tile selection: rows mult of 8, cols mult of 128; shrink tn first
    # (keeps the column axis splitting across v7x's two TensorCores) ----------
    tm_eff = min(tm, _round_up(N, 8))
    tn_eff = min(tn, _round_up(M, 128))
    while (tn_eff > 128 and tn_eff % 256 == 0
           and _vmem_estimate(tm_eff, tn_eff, tk) > budget):
        tn_eff //= 2
    while (tm_eff > 8 and tm_eff % 16 == 0
           and _vmem_estimate(tm_eff, tn_eff, tk) > budget):
        tm_eff //= 2

    n_pad = _round_up(N, tm_eff)
    m_pad = _round_up(M, tn_eff)

    x_p = x if (n_pad == N and d_pad == D) else jnp.pad(
        x, ((0, n_pad - N), (0, d_pad - D)))
    y_p = y if (m_pad == M and d_pad == D) else jnp.pad(
        y, ((0, m_pad - M), (0, d_pad - D)))

    # Hoisted out of the kernel hot loop: one-time transpose + row norms.
    yT = y_p.T                                          # (d_pad, m_pad)
    xsq = jnp.sum(x_p * x_p, axis=1, keepdims=True)     # (n_pad, 1)
    ysq = jnp.sum(y_p * y_p, axis=1)[None, :]           # (1, m_pad)

    grid = (n_pad // tm_eff, m_pad // tn_eff, nk)
    x_spec = pl.BlockSpec((tm_eff, tk), lambda i, j, k: (i, k))
    yT_spec = pl.BlockSpec((tk, tn_eff), lambda i, j, k: (k, j))
    xsq_spec = pl.BlockSpec((tm_eff, 1), lambda i, j, k: (i, 0))
    ysq_spec = pl.BlockSpec((1, tn_eff), lambda i, j, k: (0, j))
    tile_spec = pl.BlockSpec((tm_eff, tn_eff), lambda i, j, k: (i, j))
    smem_spec = pl.BlockSpec(memory_space=pltpu.MemorySpace.SMEM)
    scratch = [pltpu.VMEM((tm_eff, tn_eff), jnp.float32)]
    cparams = pltpu.CompilerParams(
        dimension_semantics=("parallel", "parallel", "arbitrary"),
        vmem_limit_bytes=int(vmem_limit))

    def run_mix(scale):
        return pl.pallas_call(
            functools.partial(_mix_kernel, r=float(r), c=float(c)),
            out_shape=jax.ShapeDtypeStruct((n_pad, m_pad), jnp.float32),
            grid=grid,
            in_specs=[smem_spec, x_spec, yT_spec, xsq_spec, ysq_spec],
            out_specs=tile_spec,
            scratch_shapes=scratch,
            compiler_params=cparams,
        )(scale, x_p, yT, xsq, ysq)

    # ----- band_width given: sigma known up front -> single fused pass ------
    if band_width is not None:
        scale = jnp.full((1, 1), -0.5 / (float(band_width) ** 2), jnp.float32)
        return run_mix(scale)[:N, :M]

    # ----- band_width is None: pdist hits HBM once, then exact median -------
    pdist = pl.pallas_call(
        _pdist_kernel,
        out_shape=jax.ShapeDtypeStruct((n_pad, m_pad), jnp.float32),
        grid=grid,
        in_specs=[x_spec, yT_spec, xsq_spec, ysq_spec],
        out_specs=tile_spec,
        scratch_shapes=scratch,
        compiler_params=cparams,
    )(x_p, yT, xsq, ysq)

    # TODO(synk): the global median (order-statistic selection over the whole
    # N*M matrix) stays in XLA as a bisection counting loop between the two
    # pallas_calls; there is no clean Pallas global-selection primitive.
    med = _exact_median(pdist[:N, :M])
    sigma = med / (2.0 * math.log(N + 1))
    scale = jnp.reshape(-0.5 / sigma, (1, 1)).astype(jnp.float32)
    return run_mix(scale)[:N, :M]


def mix_forward(x, y=None, band_width=None, r=0.1, c=0.0, tm=256, tn=1024):
    """Forward pass of the PyTorch `Mix` module (Pallas TPU)."""
    if y is None:
        y = x
    return _mix_forward_impl(x, y, band_width=band_width, r=float(r),
                             c=float(c), tm=int(tm), tn=int(tn))


# ---------------------------------------------------------------------------
# Pure-JAX reference mirroring the PyTorch module.
# ---------------------------------------------------------------------------
def _mix_reference(x, y=None, band_width=None, r=0.1, c=0.0):
    if y is None:
        y = x
    x = x.astype(jnp.float32)
    y = y.astype(jnp.float32)
    N = x.shape[0]
    gram = jnp.dot(x, y.T, precision=jax.lax.Precision.HIGHEST)
    pdist = (jnp.sum(x ** 2, axis=1, keepdims=True)
             + jnp.sum(y ** 2, axis=1) - 2.0 * gram)
    inner = jnp.sum(x[:, None, :] * y[None, :, :], axis=-1)
    if band_width is None:
        flat = jnp.sort(pdist.reshape(-1))
        length = flat.shape[0]
        mid = length // 2
        med = ((flat[mid] + flat[mid - 1]) * 0.5
               if length % 2 == 0 else flat[mid])
        sigma = med / (2.0 * math.log(N + 1))
    else:
        sigma = jnp.float32(band_width) ** 2
    return jnp.exp(-0.5 * pdist / sigma) + r * (inner + c) ** 2


if __name__ == "__main__":
    key = jax.random.PRNGKey(0)
    kx, ky, kz = jax.random.split(key, 3)

    # 1) Mix() defaults: band_width=None (median path), y defaults to x.
    N, D = 16, 32
    x = jax.random.normal(kx, (N, D), dtype=jnp.float32)
    out = jax.block_until_ready(mix_forward(x))
    ref = _mix_reference(x)
    assert out.shape == (N, N)
    assert jnp.allclose(out, ref, atol=1e-3, rtol=1e-3), (
        f"max abs err = {jnp.max(jnp.abs(out - ref))}")

    # 2) Rectangular median path (M not a multiple of 128 -> padding).
    M2 = 24
    y2 = jax.random.normal(ky, (M2, D), dtype=jnp.float32)
    out2 = jax.block_until_ready(mix_forward(x, y2))
    ref2 = _mix_reference(x, y2)
    assert out2.shape == (N, M2)
    assert jnp.allclose(out2, ref2, atol=1e-3, rtol=1e-3), (
        f"max abs err = {jnp.max(jnp.abs(out2 - ref2))}")

    # 3) Explicit band_width -> single fused pass (no pdist in HBM at all).
    out3 = jax.block_until_ready(mix_forward(x, y2, band_width=1.5))
    ref3 = _mix_reference(x, y2, band_width=1.5)
    assert jnp.allclose(out3, ref3, atol=1e-3, rtol=1e-3), (
        f"max abs err = {jnp.max(jnp.abs(out3 - ref3))}")

    # 4) Large-D case exercising the K-split accumulator path (nk > 1).
    N4, M4, D4 = 40, 72, 1100
    x4 = jax.random.normal(kz, (N4, D4), dtype=jnp.float32)
    y4 = jax.random.normal(ky, (M4, D4), dtype=jnp.float32)
    out4 = jax.block_until_ready(mix_forward(x4, y4))
    ref4 = _mix_reference(x4, y4)
    assert out4.shape == (N4, M4)
    assert jnp.allclose(out4, ref4, atol=1e-2, rtol=1e-3), (
        f"max abs err = {jnp.max(jnp.abs(out4 - ref4))}")

    print("KERNEL_OK")
</pallas_src>

<mosaic_0001>
module attributes {stable_mosaic.version = 11 : i64} {
  func.func @_pdist_kernel(%arg0: i32, %arg1: i32, %arg2: i32, %arg3: memref<16x32xf32, #tpu.memory_space<vmem>>, %arg4: memref<32x128xf32, #tpu.memory_space<vmem>>, %arg5: memref<16x1xf32, #tpu.memory_space<vmem>>, %arg6: memref<1x128xf32, #tpu.memory_space<vmem>>, %arg7: memref<16x128xf32, #tpu.memory_space<vmem>>, %arg8: memref<16x128xf32, #tpu.memory_space<vmem>>) attributes {dimension_semantics = [#tpu.dimension_semantics<parallel>, #tpu.dimension_semantics<parallel>, #tpu.dimension_semantics<arbitrary>], iteration_bounds = array<i64: 1, 1, 1>, scalar_prefetch = 0 : i64, scratch_operands = 1 : i64, tpu.core_type = #tpu.core_type<tc>, window_params = [{transform_indices = @transform_0, window_bounds = array<i64: 16, 32>}, {transform_indices = @transform_1, window_bounds = array<i64: 32, 128>}, {transform_indices = @transform_2, window_bounds = array<i64: 16, 1>}, {transform_indices = @transform_3, window_bounds = array<i64: 1, 128>}, {transform_indices = @transform_4, window_bounds = array<i64: 16, 128>}]} {
    %c0_i32 = arith.constant 0 : i32
    %0 = arith.cmpi eq, %arg2, %c0_i32 : i32
    %1 = arith.extui %0 : i1 to i32
    %c0_i32_0 = arith.constant 0 : i32
    %2 = arith.cmpi ne, %1, %c0_i32_0 : i32
    scf.if %2 {
      %cst_10 = arith.constant 0.000000e+00 : f32
      %12 = vector.broadcast %cst_10 : f32 to vector<16x128xf32>
      %c0_11 = arith.constant 0 : index
      %c0_12 = arith.constant 0 : index
      %13 = vector.load %arg8[%c0_11, %c0_12] : memref<16x128xf32, #tpu.memory_space<vmem>>, vector<16x128xf32>
      tpu.vector_store %arg8[%c0_11, %c0_12], %12 {strides = array<i32>} : memref<16x128xf32, #tpu.memory_space<vmem>>, vector<16x128xf32>,
    } else {
    }
    %c0 = arith.constant 0 : index
    %c0_1 = arith.constant 0 : index
    %3 = vector.load %arg8[%c0, %c0_1] : memref<16x128xf32, #tpu.memory_space<vmem>>, vector<16x128xf32>
    %c0_2 = arith.constant 0 : index
    %c0_3 = arith.constant 0 : index
    %4 = vector.load %arg3[%c0_2, %c0_3] : memref<16x32xf32, #tpu.memory_space<vmem>>, vector<16x32xf32>
    %c0_4 = arith.constant 0 : index
    %c0_5 = arith.constant 0 : index
    %5 = vector.load %arg4[%c0_4, %c0_5] : memref<32x128xf32, #tpu.memory_space<vmem>>, vector<32x128xf32>
    %cst = arith.constant dense<0.000000e+00> : vector<16x128xf32>
    %6 = tpu.matmul %4, %5, %cst {dimension_numbers = #tpu.dot_dimension_numbers<[1], [0], [0], [1], [0, 0, 1, 1], [], []>, precision = #tpu.contract_precision<fp32>} : vector<16x32xf32>, vector<32x128xf32>, vector<16x128xf32> -> vector<16x128xf32>
    %7 = arith.addf %3, %6 : vector<16x128xf32>
    %c0_6 = arith.constant 0 : index
    %c0_7 = arith.constant 0 : index
    %8 = vector.load %arg8[%c0_6, %c0_7] : memref<16x128xf32, #tpu.memory_space<vmem>>, vector<16x128xf32>
    tpu.vector_store %arg8[%c0_6, %c0_7], %7 {strides = array<i32>} : memref<16x128xf32, #tpu.memory_space<vmem>>, vector<16x128xf32>,
    %c0_i32_8 = arith.constant 0 : i32
    %9 = arith.cmpi eq, %arg2, %c0_i32_8 : i32
    %10 = arith.extui %9 : i1 to i32
    %c0_i32_9 = arith.constant 0 : i32
    %11 = arith.cmpi ne, %10, %c0_i32_9 : i32
    scf.if %11 {
      %c0_10 = arith.constant 0 : index
      %c0_11 = arith.constant 0 : index
      %12 = vector.load %arg5[%c0_10, %c0_11] : memref<16x1xf32, #tpu.memory_space<vmem>>, vector<16x1xf32>
      %c0_12 = arith.constant 0 : index
      %c0_13 = arith.constant 0 : index
      %13 = vector.load %arg6[%c0_12, %c0_13] : memref<1x128xf32, #tpu.memory_space<vmem>>, vector<1x128xf32>
      %14 = vector.broadcast %12 : vector<16x1xf32> to vector<16x128xf32>
      %15 = vector.broadcast %13 : vector<1x128xf32> to vector<16x128xf32>
      %16 = arith.addf %14, %15 : vector<16x128xf32>
      %c0_14 = arith.constant 0 : index
      %c0_15 = arith.constant 0 : index
      %17 = vector.load %arg8[%c0_14, %c0_15] : memref<16x128xf32, #tpu.memory_space<vmem>>, vector<16x128xf32>
      %cst_16 = arith.constant 2.000000e+00 : f32
      %18 = vector.broadcast %cst_16 : f32 to vector<16x128xf32>
      %19 = arith.mulf %18, %17 : vector<16x128xf32>
      %20 = arith.subf %16, %19 : vector<16x128xf32>
      %c0_17 = arith.constant 0 : index
      %c0_18 = arith.constant 0 : index
      %21 = vector.load %arg7[%c0_17, %c0_18] : memref<16x128xf32, #tpu.memory_space<vmem>>, vector<16x128xf32>
      tpu.vector_store %arg7[%c0_17, %c0_18], %20 {strides = array<i32>} : memref<16x128xf32, #tpu.memory_space<vmem>>, vector<16x128xf32>,
    } else {
    }
    return
  }
  func.func @transform_0(%arg0: i32, %arg1: i32, %arg2: i32) -> (i32, i32) {
    %c0_i32 = arith.constant 0 : i32
    return %arg0, %arg2 : i32, i32
  }
  func.func @transform_1(%arg0: i32, %arg1: i32, %arg2: i32) -> (i32, i32) {
    %c0_i32 = arith.constant 0 : i32
    return %arg2, %arg1 : i32, i32
  }
  func.func @transform_2(%arg0: i32, %arg1: i32, %arg2: i32) -> (i32, i32) {
    %c0_i32 = arith.constant 0 : i32
    %c0_i32_0 = arith.constant 0 : i32
    return %arg0, %c0_i32 : i32, i32
  }
  func.func @transform_3(%arg0: i32, %arg1: i32, %arg2: i32) -> (i32, i32) {
    %c0_i32 = arith.constant 0 : i32
    %c0_i32_0 = arith.constant 0 : i32
    return %c0_i32, %arg1 : i32, i32
  }
  func.func @transform_4(%arg0: i32, %arg1: i32, %arg2: i32) -> (i32, i32) {
    %c0_i32 = arith.constant 0 : i32
    return %arg0, %arg1 : i32, i32
  }
}

module attributes {stable_mosaic.version = 11 : i64} {
  func.func @_mix_kernel(%arg0: i32, %arg1: i32, %arg2: i32, %arg3: memref<1x1xf32, #tpu.memory_space<smem>>, %arg4: memref<16x32xf32, #tpu.memory_space<vmem>>, %arg5: memref<32x128xf32, #tpu.memory_space<vmem>>, %arg6: memref<16x1xf32, #tpu.memory_space<vmem>>, %arg7: memref<1x128xf32, #tpu.memory_space<vmem>>, %arg8: memref<16x128xf32, #tpu.memory_space<vmem>>, %arg9: memref<16x128xf32, #tpu.memory_space<vmem>>) attributes {dimension_semantics = [#tpu.dimension_semantics<parallel>, #tpu.dimension_semantics<parallel>, #tpu.dimension_semantics<arbitrary>], iteration_bounds = array<i64: 1, 1, 1>, scalar_prefetch = 0 : i64, scratch_operands = 1 : i64, tpu.core_type = #tpu.core_type<tc>, window_params = [{transform_indices = @transform_0, window_bounds = array<i64: 1, 1>}, {transform_indices = @transform_1, window_bounds = array<i64: 16, 32>}, {transform_indices = @transform_2, window_bounds = array<i64: 32, 128>}, {transform_indices = @transform_3, window_bounds = array<i64: 16, 1>}, {transform_indices = @transform_4, window_bounds = array<i64: 1, 128>}, {transform_indices = @transform_5, window_bounds = array<i64: 16, 128>}]} {
    %c0_i32 = arith.constant 0 : i32
    %0 = arith.cmpi eq, %arg2, %c0_i32 : i32
    %1 = arith.extui %0 : i1 to i32
    %c0_i32_0 = arith.constant 0 : i32
    %2 = arith.cmpi ne, %1, %c0_i32_0 : i32
    scf.if %2 {
      %cst_10 = arith.constant 0.000000e+00 : f32
      %12 = vector.broadcast %cst_10 : f32 to vector<16x128xf32>
      %c0_11 = arith.constant 0 : index
      %c0_12 = arith.constant 0 : index
      %13 = vector.load %arg9[%c0_11, %c0_12] : memref<16x128xf32, #tpu.memory_space<vmem>>, vector<16x128xf32>
      tpu.vector_store %arg9[%c0_11, %c0_12], %12 {strides = array<i32>} : memref<16x128xf32, #tpu.memory_space<vmem>>, vector<16x128xf32>,
    } else {
    }
    %c0 = arith.constant 0 : index
    %c0_1 = arith.constant 0 : index
    %3 = vector.load %arg9[%c0, %c0_1] : memref<16x128xf32, #tpu.memory_space<vmem>>, vector<16x128xf32>
    %c0_2 = arith.constant 0 : index
    %c0_3 = arith.constant 0 : index
    %4 = vector.load %arg4[%c0_2, %c0_3] : memref<16x32xf32, #tpu.memory_space<vmem>>, vector<16x32xf32>
    %c0_4 = arith.constant 0 : index
    %c0_5 = arith.constant 0 : index
    %5 = vector.load %arg5[%c0_4, %c0_5] : memref<32x128xf32, #tpu.memory_space<vmem>>, vector<32x128xf32>
    %cst = arith.constant dense<0.000000e+00> : vector<16x128xf32>
    %6 = tpu.matmul %4, %5, %cst {dimension_numbers = #tpu.dot_dimension_numbers<[1], [0], [0], [1], [0, 0, 1, 1], [], []>, precision = #tpu.contract_precision<fp32>} : vector<16x32xf32>, vector<32x128xf32>, vector<16x128xf32> -> vector<16x128xf32>
    %7 = arith.addf %3, %6 : vector<16x128xf32>
    %c0_6 = arith.constant 0 : index
    %c0_7 = arith.constant 0 : index
    %8 = vector.load %arg9[%c0_6, %c0_7] : memref<16x128xf32, #tpu.memory_space<vmem>>, vector<16x128xf32>
    tpu.vector_store %arg9[%c0_6, %c0_7], %7 {strides = array<i32>} : memref<16x128xf32, #tpu.memory_space<vmem>>, vector<16x128xf32>,
    %c0_i32_8 = arith.constant 0 : i32
    %9 = arith.cmpi eq, %arg2, %c0_i32_8 : i32
    %10 = arith.extui %9 : i1 to i32
    %c0_i32_9 = arith.constant 0 : i32
    %11 = arith.cmpi ne, %10, %c0_i32_9 : i32
    scf.if %11 {
      %c0_10 = arith.constant 0 : index
      %c0_11 = arith.constant 0 : index
      %12 = vector.load %arg9[%c0_10, %c0_11] : memref<16x128xf32, #tpu.memory_space<vmem>>, vector<16x128xf32>
      %c0_12 = arith.constant 0 : index
      %c0_13 = arith.constant 0 : index
      %13 = vector.load %arg6[%c0_12, %c0_13] : memref<16x1xf32, #tpu.memory_space<vmem>>, vector<16x1xf32>
      %c0_14 = arith.constant 0 : index
      %c0_15 = arith.constant 0 : index
      %14 = vector.load %arg7[%c0_14, %c0_15] : memref<1x128xf32, #tpu.memory_space<vmem>>, vector<1x128xf32>
      %15 = vector.broadcast %13 : vector<16x1xf32> to vector<16x128xf32>
      %16 = vector.broadcast %14 : vector<1x128xf32> to vector<16x128xf32>
      %17 = arith.addf %15, %16 : vector<16x128xf32>
      %cst_16 = arith.constant 2.000000e+00 : f32
      %18 = vector.broadcast %cst_16 : f32 to vector<16x128xf32>
      %19 = arith.mulf %18, %12 : vector<16x128xf32>
      %20 = arith.subf %17, %19 : vector<16x128xf32>
      %c0_17 = arith.constant 0 : index
      %c0_18 = arith.constant 0 : index
      %21 = memref.load %arg3[%c0_17, %c0_18] : memref<1x1xf32, #tpu.memory_space<smem>>
      %22 = vector.broadcast %21 : f32 to vector<16x128xf32>
      %23 = arith.mulf %20, %22 : vector<16x128xf32>
      %24 = math.exp %23 : vector<16x128xf32>
      %cst_19 = arith.constant 0.000000e+00 : f32
      %25 = vector.broadcast %cst_19 : f32 to vector<16x128xf32>
      %26 = arith.addf %12, %25 : vector<16x128xf32>
      %27 = arith.mulf %26, %26 : vector<16x128xf32>
      %cst_20 = arith.constant 1.000000e-01 : f32
      %28 = vector.broadcast %cst_20 : f32 to vector<16x128xf32>
      %29 = arith.mulf %28, %27 : vector<16x128xf32>
      %30 = arith.addf %24, %29 : vector<16x128xf32>
      %c0_21 = arith.constant 0 : index
      %c0_22 = arith.constant 0 : index
      %31 = vector.load %arg8[%c0_21, %c0_22] : memref<16x128xf32, #tpu.memory_space<vmem>>, vector<16x128xf32>
      tpu.vector_store %arg8[%c0_21, %c0_22], %30 {strides = array<i32>} : memref<16x128xf32, #tpu.memory_space<vmem>>, vector<16x128xf32>,
    } else {
    }
    return
  }
  func.func @transform_0(%arg0: i32, %arg1: i32, %arg2: i32) -> (i32, i32) {
    %c0_i32 = arith.constant 0 : i32
    %c0_i32_0 = arith.constant 0 : i32
    %c0_i32_1 = arith.constant 0 : i32
    return %c0_i32, %c0_i32_0 : i32, i32
  }
  func.func @transform_1(%arg0: i32, %arg1: i32, %arg2: i32) -> (i32, i32) {
    %c0_i32 = arith.constant 0 : i32
    return %arg0, %arg2 : i32, i32
  }
  func.func @transform_2(%arg0: i32, %arg1: i32, %arg2: i32) -> (i32, i32) {
    %c0_i32 = arith.constant 0 : i32
    return %arg2, %arg1 : i32, i32
  }
  func.func @transform_3(%arg0: i32, %arg1: i32, %arg2: i32) -> (i32, i32) {
    %c0_i32 = arith.constant 0 : i32
    %c0_i32_0 = arith.constant 0 : i32
    return %arg0, %c0_i32 : i32, i32
  }
  func.func @transform_4(%arg0: i32, %arg1: i32, %arg2: i32) -> (i32, i32) {
    %c0_i32 = arith.constant 0 : i32
    %c0_i32_0 = arith.constant 0 : i32
    return %c0_i32, %arg1 : i32, i32
  }
  func.func @transform_5(%arg0: i32, %arg1: i32, %arg2: i32) -> (i32, i32) {
    %c0_i32 = arith.constant 0 : i32
    return %arg0, %arg1 : i32, i32
  }
}

</mosaic_0001>

<bundles_post_ra>
// kernel: _mix_forward_impl.2
= control target key start
LH: loop header
LB: loop body
LE: loop exit
PB: predicated region body
PF: predicated region fallthrough
CT: control target
= control target key end

     0   :  { %vm31_vm0 = vcmask 261120   ;;  %v302_v19 = vmov 0   ;;  %s401_s1 = inlined_call_operand.vmem [shape: f32[32,128], index: 1, kind: input, shape index: {}]   ;;  %s402_s0 = inlined_call_operand.vmem [shape: f32[16,32], index: 0, kind: input, shape index: {}]   ;;  %s403_s2 = inlined_call_operand.vmem [shape: f32[16,1], index: 2, kind: input, shape index: {}]   ;;  %s404_s3 = inlined_call_operand.vmem [shape: f32[1,128], index: 3, kind: input, shape index: {}]   ;;  %s405_s4 = inlined_call_operand.vmem [shape: f32[16,128], index: 4, kind: output, shape index: {}]  }
   0x1   :  { %v30_v0 = vld [vmem:[%s401_s1 + $0x18] sm:$0xff]  ;;  %v29_v1 = vld [vmem:[%s401_s1 + $0x10] sm:$0xff]  ;;  %v28_v2 = vld [vmem:[%s401_s1 + $0x8] sm:$0xff]  ;;  %300 = vset.pattern.permute.xlu0 %v302_v19 }
   0x2   :  { %v337_v3 = vand.u32 4294901760, %v30_v0  ;;  %v339_v4 = vand.u32 4294901760, %v29_v1  ;;  %v341_v5 = vand.u32 4294901760, %v28_v2  ;;  %v27_v6 = vld [vmem:[%s401_s1] sm:$0xff]  ;;  %v26_v7 = vld [vmem:[%s402_s0 + $0x8] sm:$0xff] }
   0x3   :  { %v25_v8 = vld [vmem:[%s402_s0] sm:$0xff]  ;;  %v352_v9 = vand.u32 4294901760, %v27_v6  ;;  %v36_v10 = vsel %vm31_vm0, %v26_v7, 0  ;;  %v262_v40 = vld [vmem:[%s403_s2 + $0x8] sm:$0xff] }
   0x4   :  { %v33_v11 = vsel %vm31_vm0, %v25_v8, 0  ;;  %291 = vmatpush.msra.mxu2 %v337_v3  ;;  %v88_v12 = vsub.f32 %v30_v0, %v337_v3  ;;  %v356_v13 = vand.u32 4294901760, %v36_v10  ;;  %v94_v14 = vsub.f32 %v29_v1, %v339_v4  ;;  %51 = vmatpush.msra.mxu0 %v337_v3  ;;  %v261_v16 = vld [vmem:[%s403_s2] sm:$0xff] }
   0x5   :  { %v100_v15 = vsub.f32 %v28_v2, %v341_v5  ;;  %v106_v17 = vsub.f32 %v27_v6, %v352_v9  ;;  %v365_v18 = vand.u32 4294901760, %v33_v11  ;;  %266 = vperm.xlu0 %300, %v261_v16   ;;  %v301_v51 = vld [vmem:[%s404_s3] ss:$0 sm:$0xff] }
   0x6   :  { %292 = vmatpush.msra.mxu2 %v339_v4  ;;  %v89_v20 = vand.u32 4294901760, %v88_v12  ;;  %v67_v21 = vsub.f32 %v36_v10, %v356_v13  ;;  %v95_v22 = vand.u32 4294901760, %v94_v14  ;;  %53 = vmatpush.msra.mxu0 %v339_v4 }
   0x7   :  { %v101_v23 = vand.u32 4294901760, %v100_v15  ;;  %v107_v24 = vand.u32 4294901760, %v106_v17  ;;  %v59_v25 = vsub.f32 %v33_v11, %v365_v18 }
   0x8   :  { %293 = vmatpush.msra.mxu2 %v341_v5  ;;  %v90_v26 = vsub.f32 %v88_v12, %v89_v20  ;;  %v68_v27 = vand.u32 4294901760, %v67_v21  ;;  %v96_v28 = vsub.f32 %v94_v14, %v95_v22  ;;  %55 = vmatpush.msra.mxu0 %v341_v5 }
   0x9   :  { %v102_v29 = vsub.f32 %v100_v15, %v101_v23  ;;  %v60_v30 = vand.u32 4294901760, %v59_v25  ;;  %v108_v34 = vsub.f32 %v106_v17, %v107_v24 }
   0xa   :  { %294 = vmatpush.msra.mxu2 %v352_v9  ;;  %v91_v31 = vand.u32 4294901760, %v90_v26  ;;  %v69_v32 = vsub.f32 %v67_v21, %v68_v27  ;;  %v97_v33 = vand.u32 4294901760, %v96_v28  ;;  %57 = vmatpush.msra.mxu0 %v352_v9 }
   0xb   :  { %v61_v35 = vsub.f32 %v59_v25, %v60_v30  ;;  %v103_v37 = vand.u32 4294901760, %v102_v29  ;;  %v109_v39 = vand.u32 4294901760, %v108_v34 }
   0xc   :  { %134 = vmatpush.msrb.mxu2 %v88_v12  ;;  %203 = vmatpush.msrb.mxu0 %v89_v20  ;;  %v70_v36 = vand.u32 4294901760, %v69_v32 }
   0xd   :  { %295 = vmatpush.msra.mxu3 %v91_v31  ;;  %92 = vmatpush.msra.mxu1 %v91_v31  ;;  %v62_v38 = vand.u32 4294901760, %v61_v35 }
   0xe   :  { %137 = vmatpush.msrb.mxu2 %v94_v14  ;;  %207 = vmatpush.msrb.mxu0 %v95_v22 }
   0xf   :  { %71 = vmatmul.f32.vlgmr.msra.gmra.mxu2 %v70_v36  ;;  %296 = vmatpush.msra.mxu3 %v97_v33 }
  0x10   :  { %140 = vmatpush.msrb.mxu2 %v100_v15  ;;  %98 = vmatpush.msra.mxu1 %v97_v33 }
  0x11   :  { %297 = vmatpush.msra.mxu3 %v103_v37  ;;  %63 = vmatmul.f32.vlgmr.msra.gmra.mxu0 %v62_v38 }
  0x12   :  { %143 = vmatpush.msrb.mxu2 %v106_v17  ;;  %104 = vmatpush.msra.mxu1 %v103_v37 }
  0x13   :  { %298 = vmatpush.msra.mxu3 %v109_v39  ;;  %211 = vmatpush.msrb.mxu0 %v101_v23 }
  0x14   :  { %116 = vmatmul.f32.vlgmr.msra.gmra.mxu3 %v356_v13  ;;  %110 = vmatpush.msra.mxu1 %v109_v39 }
  0x15   :  { %168 = vmatpush.msrb.mxu3 %v337_v3  ;;  %112 = vmatmul.f32.vlgmr.msra.gmra.mxu1 %v365_v18 }
  0x16   :  { %238 = vmatpush.msrb.mxu1 %v337_v3  ;;  %215 = vmatpush.msrb.mxu0 %v107_v24 }
  0x17   :  { %146 = vmatmul.f32.vlgmr.msrb.gmra.mxu2 %v59_v25  ;;  %170 = vmatpush.msrb.mxu3 %v339_v4 }
  0x18   :  { %240 = vmatpush.msrb.mxu1 %v339_v4  ;;  %271 = vperm.xlu0 %300, %v262_v40  }
  0x19   :  { %172 = vmatpush.msrb.mxu3 %v341_v5  ;;  %217 = vmatmul.f32.vlgmr.msrb.gmra.mxu0 %v365_v18 }
  0x1a   :  { %242 = vmatpush.msrb.mxu1 %v341_v5 }
  0x1b   :  { %174 = vmatpush.msrb.mxu3 %v352_v9 }
  0x1c   :  { %178 = vmatmul.f32.vlgmr.msrb.gmra.mxu3 %v60_v30  ;;  %244 = vmatpush.msrb.mxu1 %v352_v9 }
  0x1d   :  { %246 = vmatmul.f32.vlgmr.msrb.gmra.mxu1 %v365_v18 }
  0x1f   :  { %151 = vmatmul.f32.gmra.mxu2 %v67_v21 }
  0x21   :  { %221 = vmatmul.f32.gmra.mxu0 %v356_v13 }
  0x24   :  { %184 = vmatmul.f32.gmra.mxu3 %v68_v27 }
  0x25   :  { %250 = vmatmul.f32.gmra.mxu1 %v356_v13 }
  0x77   :  { %v267_v53 = vpop.permute.xlu0 %266 }
  0x78   :  { %v277_v57 = vadd.f32 %v301_v51, %v267_v53 }
  0x8a   :  { %v272_v3 = vpop.permute.xlu0 %271 }
  0x8b   :  { %v278_v5 = vadd.f32 %v301_v51, %v272_v3 }
  0x8e   :  { %v64_v42 = vpop.f32.mrf.mxu0 }
  0x92   :  { %v72_v41 = vpop.f32.mrf.mxu2  ;;  %v113_v44 = vpop.f32.mrf.mxu1 }
  0x93   :  { %v114_v45 = vadd.f32 %v113_v44, %v64_v42 }
  0x96   :  { %v218_v47 = vpop.f32.mrf.mxu0 }
  0x97   :  { %v117_v43 = vpop.f32.mrf.mxu3 }
  0x98   :  { %v118_v56 = vadd.f32 %v117_v43, %v72_v41 }
  0x9a   :  { %v147_v46 = vpop.f32.mrf.mxu2  ;;  %v247_v50 = vpop.f32.mrf.mxu1 }
  0x9b   :  { %v148_v48 = vadd.f32 %v147_v46, %v114_v45 }
  0x9e   :  { %v222_v62 = vpop.f32.mrf.mxu0 }
  0x9f   :  { %v179_v49 = vpop.f32.mrf.mxu3 }
  0xa0   :  { %v180_v52 = vadd.f32 %v179_v49, %v148_v48 }
  0xa2   :  { %v219_v54 = vadd.f32 %v218_v47, %v180_v52  ;;  %v152_v55 = vpop.f32.mrf.mxu2  ;;  %v251_v1 = vpop.f32.mrf.mxu1 }
  0xa3   :  { %v153_v59 = vadd.f32 %v152_v55, %v118_v56 }
  0xa4   :  { %v248_v58 = vadd.f32 %v247_v50, %v219_v54 }
  0xa6   :  { %v281_v60 = vmul.f32 2.0, %v248_v58 }
  0xa7   :  { %v185_v61 = vpop.f32.mrf.mxu3 }
  0xa8   :  { %v283_v63 = vsub.f32 %v277_v57, %v281_v60  ;;  %v186_v0 = vadd.f32 %v185_v61, %v153_v59 }
  0xaa   :  { %285 = vst [vmem:[%s405_s4] sm:$0xff] %v283_v63  ;;  %v223_v2 = vadd.f32 %v222_v62, %v186_v0 }
  0xac   :  { %v252_v4 = vadd.f32 %v251_v1, %v223_v2 }
  0xae   :  { %v282_v6 = vmul.f32 2.0, %v252_v4 }
  0xb0   :  { %v284_v7 = vsub.f32 %v278_v5, %v282_v6 }
  0xb2   :  { %286 = vst [vmem:[%s405_s4 + $0x8] sm:$0xff] %v284_v7 }

// kernel: _mix_forward_impl.3
= control target key start
LH: loop header
LB: loop body
LE: loop exit
PB: predicated region body
PF: predicated region fallthrough
CT: control target
= control target key end

     0   :  { %vm36_vm0 = vcmask 261120   ;;  %s471_s0 = inlined_call_operand.<no memory space> [shape: f32[1,1], index: 0, kind: input, shape index: {}]   ;;  %s472_s1 = inlined_call_operand.vmem [shape: f32[16,32], index: 1, kind: input, shape index: {}]   ;;  %s473_s2 = inlined_call_operand.vmem [shape: f32[32,128], index: 2, kind: input, shape index: {}]   ;;  %s474_s3 = inlined_call_operand.vmem [shape: f32[16,1], index: 3, kind: input, shape index: {}]   ;;  %s475_s4 = inlined_call_operand.vmem [shape: f32[1,128], index: 4, kind: input, shape index: {}]   ;;  %s476_s5 = inlined_call_operand.hbm [shape: f32[16,128], index: 5, kind: output, shape index: {}]  }
   0x1   :  { %v35_v0 = vld [vmem:[%s473_s2 + $0x18] sm:$0xff]  ;;  %v34_v1 = vld [vmem:[%s473_s2 + $0x10] sm:$0xff]  ;;  %v33_v2 = vld [vmem:[%s473_s2 + $0x8] sm:$0xff] }
   0x2   :  { %v413_v3 = vand.u32 4294901760, %v35_v0  ;;  %v415_v4 = vand.u32 4294901760, %v34_v1  ;;  %v417_v5 = vand.u32 4294901760, %v33_v2  ;;  %v32_v6 = vld [vmem:[%s473_s2] sm:$0xff]  ;;  %v31_v7 = vld [vmem:[%s472_s1 + $0x8] sm:$0xff] }
   0x3   :  { %v30_v8 = vld [vmem:[%s472_s1] sm:$0xff]  ;;  %v428_v9 = vand.u32 4294901760, %v32_v6  ;;  %v41_v10 = vsel %vm36_vm0, %v31_v7, 0 }
   0x4   :  { %v38_v11 = vsel %vm36_vm0, %v30_v8, 0  ;;  %326 = vmatpush.msra.mxu2 %v413_v3  ;;  %v93_v12 = vsub.f32 %v35_v0, %v413_v3  ;;  %v432_v13 = vand.u32 4294901760, %v41_v10  ;;  %v99_v14 = vsub.f32 %v34_v1, %v415_v4  ;;  %56 = vmatpush.msra.mxu0 %v413_v3  ;;  %v268_v16 = vld [vmem:[%s474_s3] sm:$0xff] }
   0x5   :  { %v105_v15 = vsub.f32 %v33_v2, %v417_v5 }
   0x6   :  { %11 = vsyncpa [#allocation5], 0  ;;  %v111_v17 = vsub.f32 %v32_v6, %v428_v9  ;;  %v63_v18 = vand.u32 4294901760, %v38_v11  ;;  %v370_v19 = vmov 0   ;;  %327 = vmatpush.msra.mxu2 %v415_v4  ;;  %v94_v20 = vand.u32 4294901760, %v93_v12  ;;  %58 = vmatpush.msra.mxu0 %v415_v4  ;;  %v269_v40 = vld [vmem:[%s474_s3 + $0x8] sm:$0xff] }
   0x7   :  { %338 = vset.pattern.permute.xlu0 %v370_v19  ;;  %v72_v21 = vsub.f32 %v41_v10, %v432_v13  ;;  %v100_v22 = vand.u32 4294901760, %v99_v14  ;;  %v106_v23 = vand.u32 4294901760, %v105_v15  ;;  %v339_v51 = vld [vmem:[%s475_s4] ss:$0 sm:$0xff]  ;;  %v291_v61 = vstv %s471_s0  ;;  %s371_s0 = smov [#allocation4]   ;;  %s314_s12 = sshll.u32 %s476_s5, 4  ;;  %s315_s12 = int_to_ptr.hbm [resolvable:$true] %s314_s12 }
   0x8   :  { %v112_v24 = vand.u32 4294901760, %v111_v17  ;;  %v64_v25 = vsub.f32 %v38_v11, %v63_v18  ;;  %273 = vperm.xlu0 %338, %v268_v16   ;;  %328 = vmatpush.msra.mxu2 %v417_v5  ;;  %v95_v26 = vsub.f32 %v93_v12, %v94_v20  ;;  %s312_s4 = sshll.u32 %s371_s0, 4  ;;  %s372_s13 = smov 128   ;;  %s313_s4 = int_to_ptr.vmem [resolvable:$true] %s312_s4 }
   0x9   :  { %v73_v27 = vand.u32 4294901760, %v72_v21  ;;  %v101_v28 = vsub.f32 %v99_v14, %v100_v22  ;;  %v107_v29 = vsub.f32 %v105_v15, %v106_v23  ;;  %60 = vmatpush.msra.mxu0 %v417_v5  ;;  %s373_s14 = smov 8  }
   0xa   :  { %v65_v30 = vand.u32 4294901760, %v64_v25  ;;  %329 = vmatpush.msra.mxu2 %v428_v9  ;;  %v96_v31 = vand.u32 4294901760, %v95_v26  ;;  %v113_v34 = vsub.f32 %v111_v17, %v112_v24 }
   0xb   :  { %v74_v32 = vsub.f32 %v72_v21, %v73_v27  ;;  %v102_v33 = vand.u32 4294901760, %v101_v28  ;;  %62 = vmatpush.msra.mxu0 %v428_v9  ;;  %v108_v37 = vand.u32 4294901760, %v107_v29 }
   0xc   :  { %139 = vmatpush.msrb.mxu2 %v93_v12  ;;  %v66_v35 = vsub.f32 %v64_v25, %v65_v30  ;;  %330 = vmatpush.msra.mxu3 %v96_v31  ;;  %v114_v39 = vand.u32 4294901760, %v113_v34 }
   0xd   :  { %208 = vmatpush.msrb.mxu0 %v94_v20  ;;  %v75_v36 = vand.u32 4294901760, %v74_v32  ;;  %97 = vmatpush.msra.mxu1 %v96_v31 }
   0xe   :  { %142 = vmatpush.msrb.mxu2 %v99_v14  ;;  %v67_v38 = vand.u32 4294901760, %v66_v35  ;;  %331 = vmatpush.msra.mxu3 %v102_v33 }
   0xf   :  { %212 = vmatpush.msrb.mxu0 %v100_v22  ;;  %76 = vmatmul.f32.vlgmr.msra.gmra.mxu2 %v75_v36 }
  0x10   :  { %145 = vmatpush.msrb.mxu2 %v105_v15  ;;  %103 = vmatpush.msra.mxu1 %v102_v33 }
  0x11   :  { %332 = vmatpush.msra.mxu3 %v108_v37  ;;  %68 = vmatmul.f32.vlgmr.msra.gmra.mxu0 %v67_v38 }
  0x12   :  { %148 = vmatpush.msrb.mxu2 %v111_v17  ;;  %109 = vmatpush.msra.mxu1 %v108_v37 }
  0x13   :  { %333 = vmatpush.msra.mxu3 %v114_v39  ;;  %216 = vmatpush.msrb.mxu0 %v106_v23 }
  0x14   :  { %121 = vmatmul.f32.vlgmr.msra.gmra.mxu3 %v432_v13  ;;  %115 = vmatpush.msra.mxu1 %v114_v39 }
  0x15   :  { %173 = vmatpush.msrb.mxu3 %v413_v3  ;;  %117 = vmatmul.f32.vlgmr.msra.gmra.mxu1 %v63_v18 }
  0x16   :  { %243 = vmatpush.msrb.mxu1 %v413_v3  ;;  %220 = vmatpush.msrb.mxu0 %v112_v24 }
  0x17   :  { %151 = vmatmul.f32.vlgmr.msrb.gmra.mxu2 %v64_v25  ;;  %175 = vmatpush.msrb.mxu3 %v415_v4 }
  0x18   :  { %245 = vmatpush.msrb.mxu1 %v415_v4  ;;  %278 = vperm.xlu0 %338, %v269_v40  }
  0x19   :  { %177 = vmatpush.msrb.mxu3 %v417_v5  ;;  %222 = vmatmul.f32.vlgmr.msrb.gmra.mxu0 %v63_v18 }
  0x1a   :  { %247 = vmatpush.msrb.mxu1 %v417_v5 }
  0x1b   :  { %179 = vmatpush.msrb.mxu3 %v428_v9 }
  0x1c   :  { %183 = vmatmul.f32.vlgmr.msrb.gmra.mxu3 %v65_v30  ;;  %249 = vmatpush.msrb.mxu1 %v428_v9 }
  0x1d   :  { %251 = vmatmul.f32.vlgmr.msrb.gmra.mxu1 %v63_v18 }
  0x1f   :  { %156 = vmatmul.f32.gmra.mxu2 %v72_v21 }
  0x21   :  { %226 = vmatmul.f32.gmra.mxu0 %v432_v13 }
  0x24   :  { %189 = vmatmul.f32.gmra.mxu3 %v73_v27 }
  0x25   :  { %255 = vmatmul.f32.gmra.mxu1 %v432_v13 }
  0x7a   :  { %v274_v53 = vpop.permute.xlu0 %273 }
  0x7b   :  { %v284_v57 = vadd.f32 %v339_v51, %v274_v53 }
  0x8a   :  { %v279_v5 = vpop.permute.xlu0 %278 }
  0x8b   :  { %v285_v8 = vadd.f32 %v339_v51, %v279_v5 }
  0x8e   :  { %v69_v42 = vpop.f32.mrf.mxu0 }
  0x92   :  { %v77_v41 = vpop.f32.mrf.mxu2  ;;  %v118_v44 = vpop.f32.mrf.mxu1 }
  0x93   :  { %v119_v45 = vadd.f32 %v118_v44, %v69_v42 }
  0x96   :  { %v223_v47 = vpop.f32.mrf.mxu0 }
  0x97   :  { %v122_v43 = vpop.f32.mrf.mxu3 }
  0x98   :  { %v123_v56 = vadd.f32 %v122_v43, %v77_v41 }
  0x9a   :  { %v152_v46 = vpop.f32.mrf.mxu2  ;;  %v252_v50 = vpop.f32.mrf.mxu1 }
  0x9b   :  { %v153_v48 = vadd.f32 %v152_v46, %v119_v45 }
  0x9e   :  { %v227_v63 = vpop.f32.mrf.mxu0 }
  0x9f   :  { %v184_v49 = vpop.f32.mrf.mxu3 }
  0xa0   :  { %v185_v52 = vadd.f32 %v184_v49, %v153_v48 }
  0xa2   :  { %v224_v54 = vadd.f32 %v223_v47, %v185_v52  ;;  %v157_v55 = vpop.f32.mrf.mxu2  ;;  %v256_v2 = vpop.f32.mrf.mxu1 }
  0xa3   :  { %v158_v59 = vadd.f32 %v157_v55, %v123_v56 }
  0xa4   :  { %v253_v58 = vadd.f32 %v252_v50, %v224_v54 }
  0xa6   :  { %v286_v60 = vmul.f32 2.0, %v253_v58  ;;  %v300_v10 = vmul.f32 %v253_v58, %v253_v58 }
  0xa7   :  { %v190_v62 = vpop.f32.mrf.mxu3 }
  0xa8   :  { %v288_v0 = vsub.f32 %v284_v57, %v286_v60  ;;  %v191_v1 = vadd.f32 %v190_v62, %v158_v59  ;;  %v302_v13 = vmul.f32 0.1, %v300_v10 }
  0xaa   :  { %v292_v3 = vmul.f32 %v291_v61, %v288_v0  ;;  %v228_v4 = vadd.f32 %v227_v63, %v191_v1 }
  0xac   :  { %v294_v6 = vmul.f32 1.442695, %v292_v3  ;;  %v257_v7 = vadd.f32 %v256_v2, %v228_v4 }
  0xae   :  { %340 = vpow2.f32 %v294_v6  ;;  %v287_v9 = vmul.f32 2.0, %v257_v7  ;;  %v301_v17 = vmul.f32 %v257_v7, %v257_v7 }
  0xb0   :  { %v289_v11 = vsub.f32 %v285_v8, %v287_v9  ;;  %v303_v18 = vmul.f32 0.1, %v301_v17 }
  0xb2   :  { %v293_v12 = vmul.f32 %v291_v61, %v289_v11 }
  0xb4   :  { %v341_v14 = vpop.eup %340  ;;  %v296_v15 = vmul.f32 1.442695, %v293_v12 }
  0xb5   :  { %v304_v16 = vadd.f32 %v341_v14, %v302_v13 }
  0xb6   :  { %342 = vpow2.f32 %v296_v15 }
  0xb7   :  { %306 = vst [vmem:[#allocation4] sm:$0xff] %v304_v16 }
  0xbc   :  { %v343_v19 = vpop.eup %342 }
  0xbd   :  { %v305_v20 = vadd.f32 %v343_v19, %v303_v18 }
  0xbf   :  { %307 = vst [vmem:[#allocation4 + $0x8] sm:$0xff] %v305_v20 }
  0xc0   :  { %320 = dma.vmem_to_hbm [thread:$0]  %s313_s4, 256, %s315_s12, [#allocation5], %s372_s13, %s372_s13, %s373_s14  }
  0xc1   :  { %368 = dma.done.wait [#allocation5], 256  }
  0xc2   :  { %369 = vsyncadd [#allocation5], 4294967040 }
  0xc3   :  { %325 = vsyncpa [#allocation5], 1 }

</bundles_post_ra>
